<compile_context>
chip_gen: v6e
topology: v6e:2x2x1
jax: 0.10.0
libtpu: 0.0.40
codegen_flags: <defaults>
</compile_context>

<pallas_src>
import jax
import jax.numpy as jnp
from jax.experimental import pallas as pl
from jax.experimental.pallas import tpu as pltpu


# Per-operand block target: 4 MiB -> 3 operands x 2 pipeline buffers = 24 MiB.
_TILE_BYTES = 4 * 1024 * 1024
# Explicit scoped-VMEM limit (buffers + compiler-internal scratch headroom).
# Fits v7x's 64 MiB physical VMEM and is well under v5e/v6e's 128 MiB.
_VMEM_LIMIT_BYTES = 48 * 1024 * 1024
# Below this per-operand size the fused XLA add is already at parity; use jnp.
_MIN_PALLAS_BYTES = 32 * 1024 * 1024


def _skip_add_kernel(x_ref, b_ref, o_ref):
    # Pure elementwise add on the VPU; one full-lane-width tile per grid step.
    o_ref[...] = x_ref[...] + b_ref[...]


def _choose_lane(total):
    """Largest lane width (multiple of 128) that evenly divides the element count."""
    for lane in (1024, 512, 256, 128):
        if total % lane == 0:
            return lane
    return None


def _sublane_multiple(itemsize):
    """Native sublane granularity: 8 for 32-bit, 16 for 16-bit, 32 for 8-bit dtypes."""
    return max(8, 32 // itemsize)


def _choose_tile_rows(rows, lane, itemsize):
    """Row-tile within the VMEM budget; prefers an even grid so both v7x TCs get work."""
    sublane = _sublane_multiple(itemsize)
    bytes_per_row = lane * itemsize
    budget_rows = max(sublane, (_TILE_BYTES // bytes_per_row) // sublane * sublane)

    if rows <= budget_rows:
        # Whole slab fits one block.  Split into two aligned halves when possible so
        # both v7x TensorCores get work under dimension_semantics=("parallel",).
        half = pl.cdiv(rows, 2)
        half_aligned = pl.cdiv(half, sublane) * sublane
        if rows > sublane and half_aligned < rows:
            return half_aligned
        return rows  # single block == full array dims (always layout-legal)

    tile = budget_rows
    # Prefer an even number of grid steps (v7x: both TensorCores get equal work).
    if pl.cdiv(rows, tile) % 2 == 1:
        steps = pl.cdiv(rows, tile) + 1
        tile_even = pl.cdiv(pl.cdiv(rows, steps), sublane) * sublane
        if tile_even >= sublane and pl.cdiv(rows, tile_even) % 2 == 0:
            tile = tile_even
    return tile


def skip_block_forward(x, block, a=0.5, b=0.5, c=0.0, *,
                       donate_x=False, force_pallas=False):
    """SkipBlock.forward(x, block) == x + block.

    a, b, c mirror the module's scalar parameters; they are dead code in the
    live PyTorch forward path (everything after the first return), so they are
    intentionally not used by the kernel.

    donate_x: set True only when x is dead after this call (e.g. under jax.jit
    with x donated) -- then the output aliases x's HBM buffer.  If XLA cannot
    prove x is dead it inserts a defensive full copy, which costs an extra
    N-byte HBM read + write, so the default is False.
    """
    assert x.shape == block.shape and x.dtype == block.dtype
    total = x.size
    itemsize = jnp.dtype(x.dtype).itemsize

    lane = _choose_lane(total)
    use_pallas = force_pallas or (total * itemsize >= _MIN_PALLAS_BYTES)
    if lane is None or not use_pallas:
        # TODO(synk): element counts not divisible by 128 would need padding to take
        # the lane-dense Pallas path; the fused XLA add is already optimal for those
        # shapes and for small inputs where dispatch/pipeline-setup cost dominates.
        # The biggest absolute win for this op is fusing the add into the producer
        # of `block` (traffic is pinned at 3N bytes as a standalone kernel).
        return x + block

    rows = total // lane
    tile_rows = _choose_tile_rows(rows, lane, itemsize)
    grid = (pl.cdiv(rows, tile_rows),)

    # Metadata-only reshape of the contiguous (default row-major layout) arrays into a
    # lane-dense slab: last dim -> lanes (multiple of 128), rows -> sublanes.  With the
    # default layout this lowers to a bitcast, not a copy.
    x2 = x.reshape(rows, lane)
    b2 = block.reshape(rows, lane)

    out2 = pl.pallas_call(
        _skip_add_kernel,
        out_shape=jax.ShapeDtypeStruct((rows, lane), x.dtype),
        grid=grid,
        in_specs=[
            pl.BlockSpec((tile_rows, lane), lambda i: (i, 0)),
            pl.BlockSpec((tile_rows, lane), lambda i: (i, 0)),
        ],
        out_specs=pl.BlockSpec((tile_rows, lane), lambda i: (i, 0)),
        input_output_aliases=({0: 0} if donate_x else {}),
        cost_estimate=pl.CostEstimate(
            flops=total,
            bytes_accessed=3 * total * itemsize,
            transcendentals=0,
        ),
        compiler_params=pltpu.CompilerParams(
            dimension_semantics=("parallel",),
            vmem_limit_bytes=_VMEM_LIMIT_BYTES,
        ),
    )(x2, b2)

    return out2.reshape(x.shape)


if __name__ == "__main__":
    key = jax.random.PRNGKey(0)
    kx, kb, kxl, kbl, kxh, kbh = jax.random.split(key, 6)

    # Deterministic scalar parameters (shapes from nn.Parameter(torch.Tensor([v]))).
    a_param = jnp.array([0.5], dtype=jnp.float32)
    b_param = jnp.array([0.25], dtype=jnp.float32)
    c_param = jnp.array([0.1], dtype=jnp.float32)

    # Small NCHW test, forced through the Pallas path (single lane-dense block).
    x = jax.random.normal(kx, (2, 4, 16, 16), dtype=jnp.float32)      # NCHW
    block = jax.random.normal(kb, (2, 4, 16, 16), dtype=jnp.float32)  # NCHW
    ref = x + block
    out = skip_block_forward(
        x, block,
        a=float(a_param[0]), b=float(b_param[0]), c=float(c_param[0]),
        force_pallas=True,
    )
    jax.block_until_ready(out)
    assert out.shape == ref.shape
    assert jnp.allclose(out, ref, atol=1e-6), "mismatch vs reference (small f32)"

    # Larger f32 test exercising the tiled, auto-pipelined, even-length grid path
    # (rows=1024, lane=1024, tile=(512, 1024), grid=(2,), 'parallel').
    xl = jax.random.normal(kxl, (8, 8, 128, 128), dtype=jnp.float32)
    bl = jax.random.normal(kbl, (8, 8, 128, 128), dtype=jnp.float32)
    refl = xl + bl
    outl = skip_block_forward(xl, bl, force_pallas=True)
    jax.block_until_ready(outl)
    assert outl.shape == refl.shape
    assert jnp.allclose(outl, refl, atol=1e-6), "mismatch vs reference (large f32)"

    # bf16 test exercising dtype-aware sublane alignment (tile rows multiple of 16).
    xh = jax.random.normal(kxh, (4, 8, 64, 128), dtype=jnp.bfloat16)
    bh = jax.random.normal(kbh, (4, 8, 64, 128), dtype=jnp.bfloat16)
    refh = xh + bh
    outh = skip_block_forward(xh, bh, force_pallas=True)
    jax.block_until_ready(outh)
    assert outh.shape == refh.shape
    assert jnp.allclose(outh.astype(jnp.float32), refh.astype(jnp.float32),
                        atol=1e-2), "mismatch vs reference (bf16)"

    print("KERNEL_OK")
</pallas_src>

<mosaic_0001>
module attributes {stable_mosaic.version = 11 : i64} {
  func.func @_skip_add_kernel(%arg0: i32, %arg1: memref<2x1024xf32, #tpu.memory_space<vmem>>, %arg2: memref<2x1024xf32, #tpu.memory_space<vmem>>, %arg3: memref<2x1024xf32, #tpu.memory_space<vmem>>) attributes {dimension_semantics = [#tpu.dimension_semantics<parallel>], iteration_bounds = array<i64: 1>, scalar_prefetch = 0 : i64, scratch_operands = 0 : i64, tpu.core_type = #tpu.core_type<tc>, window_params = [{transform_indices = @transform_0, window_bounds = array<i64: 2, 1024>}, {transform_indices = @transform_1, window_bounds = array<i64: 2, 1024>}, {transform_indices = @transform_2, window_bounds = array<i64: 2, 1024>}]} {
    %c0 = arith.constant 0 : index
    %c0_0 = arith.constant 0 : index
    %0 = vector.load %arg1[%c0, %c0_0] : memref<2x1024xf32, #tpu.memory_space<vmem>>, vector<2x1024xf32>
    %c0_1 = arith.constant 0 : index
    %c0_2 = arith.constant 0 : index
    %1 = vector.load %arg2[%c0_1, %c0_2] : memref<2x1024xf32, #tpu.memory_space<vmem>>, vector<2x1024xf32>
    %2 = arith.addf %0, %1 : vector<2x1024xf32>
    %c0_3 = arith.constant 0 : index
    %c0_4 = arith.constant 0 : index
    %3 = vector.load %arg3[%c0_3, %c0_4] : memref<2x1024xf32, #tpu.memory_space<vmem>>, vector<2x1024xf32>
    tpu.vector_store %arg3[%c0_3, %c0_4], %2 {strides = array<i32>} : memref<2x1024xf32, #tpu.memory_space<vmem>>, vector<2x1024xf32>,
    return
  }
  func.func @transform_0(%arg0: i32) -> (i32, i32) {
    %c0_i32 = arith.constant 0 : i32
    %c0_i32_0 = arith.constant 0 : i32
    return %arg0, %c0_i32 : i32, i32
  }
  func.func @transform_1(%arg0: i32) -> (i32, i32) {
    %c0_i32 = arith.constant 0 : i32
    %c0_i32_0 = arith.constant 0 : i32
    return %arg0, %c0_i32 : i32, i32
  }
  func.func @transform_2(%arg0: i32) -> (i32, i32) {
    %c0_i32 = arith.constant 0 : i32
    %c0_i32_0 = arith.constant 0 : i32
    return %arg0, %c0_i32 : i32, i32
  }
}

</mosaic_0001>

<bundles_post_ra>
// kernel: tpu_custom_call.1
= control target key start
LH: loop header
LB: loop body
LE: loop exit
PB: predicated region body
PF: predicated region fallthrough
CT: control target
= control target key end

     0   :  { %7 = vsyncpa [#allocation3], 0  ;;  %s156_s0 = inlined_call_operand.hbm [shape: f32[2,1024], index: 0, kind: input, shape index: {}]   ;;  %s157_s1 = inlined_call_operand.hbm [shape: f32[2,1024], index: 1, kind: input, shape index: {}]   ;;  %s158_s2 = inlined_call_operand.hbm [shape: f32[2,1024], index: 2, kind: output, shape index: {}]  }
   0x1   :  { %8 = vsyncpa [#allocation6], 0 }
   0x2   :  { %9 = vsyncpa [#allocation4], 0  ;;  %s129_s9 = smov [#allocation2]   ;;  %s130_s11 = smov [#allocation5]  }
   0x3   :  { %s16_s10 = sshll.u32 %s129_s9, 4  ;;  %s26_s12 = sshll.u32 %s130_s11, 4  ;;  %s17_s10 = int_to_ptr.vmem [resolvable:$true] %s16_s10  ;;  %s27_s12 = int_to_ptr.vmem [resolvable:$true] %s26_s12 }
   0x4   :  { %s71_s13 = scalar_lea.vmem %s17_s10, 256  ;;  %p76_p1 = scmp.lt.s32.totalorder %s17_s10, %s17_s10 }
   0x5   :  { %p72_p0 = scmp.ne.s32.totalorder %s17_s10, %s71_s13  ;;  %p77_p2 = scmp.lt.s32.totalorder %s71_s13, %s71_s13 }
   0x7   :  { %p78_p3 = por %p77_p2, %p76_p1 }
   0x9   :  { %p79_p4 = pnand %p78_p3, %p72_p0 }
   0xb   :  { %82 = shalt.err (!%p79_p4)
}
   0xc   :  { %19 = dma.hbm_to_vmem [thread:$0]  %s156_s0, 256, %s17_s10, [#allocation3]  }
   0xd   :  { %s91_s16 = scalar_lea.vmem %s27_s12, 256  ;;  %p96_p6 = scmp.lt.s32.totalorder %s27_s12, %s27_s12 }
   0xe   :  { %p92_p5 = scmp.ne.s32.totalorder %s27_s12, %s91_s16  ;;  %p97_p7 = scmp.lt.s32.totalorder %s91_s16, %s91_s16 }
  0x10   :  { %p98_p8 = por %p97_p7, %p96_p6 }
  0x12   :  { %p99_p9 = pnand %p98_p8, %p92_p5 }
  0x14   :  { %102 = shalt.err (!%p99_p9)
}
  0x15   :  { %29 = dma.hbm_to_vmem [thread:$0]  %s157_s1, 256, %s27_s12, [#allocation6]  }
  0x16   :  { %123 = dma.done.wait [#allocation3], 256  }
  0x17   :  { %124 = vsyncadd [#allocation3], 4294967040 }
  0x18   :  { %125 = dma.done.wait [#allocation6], 256  }
  0x19   :  { %126 = vsyncadd [#allocation6], 4294967040  ;;  %s131_s19 = smov [#allocation7]   ;;  %v36_v0 = vld [vmem:[#allocation2] sm:$0xff]  ;;  %v38_v1 = vld [vmem:[#allocation5] sm:$0xff] }
  0x1a   :  { %s50_s20 = sshll.u32 %s131_s19, 4  ;;  %v37_v2 = vld [vmem:[#allocation2 + $0x8] sm:$0xff]  ;;  %v40_v3 = vadd.f32 %v38_v1, %v36_v0  ;;  %v39_v4 = vld [vmem:[#allocation5 + $0x8] sm:$0xff]  ;;  %s51_s20 = int_to_ptr.vmem [resolvable:$true] %s50_s20 }
  0x1b   :  { %v41_v5 = vadd.f32 %v39_v4, %v37_v2  ;;  %s103_s0 = scalar_lea.vmem %s51_s20, 256  ;;  %p108_p11 = scmp.lt.s32.totalorder %s51_s20, %s51_s20 }
  0x1c   :  { %42 = vst [vmem:[#allocation7] sm:$0xff] %v40_v3  ;;  %p104_p10 = scmp.ne.s32.totalorder %s51_s20, %s103_s0  ;;  %p109_p12 = scmp.lt.s32.totalorder %s103_s0, %s103_s0 }
  0x1d   :  { %43 = vst [vmem:[#allocation7 + $0x8] sm:$0xff] %v41_v5 }
  0x1e   :  { %p110_p13 = por %p109_p12, %p108_p11 }
  0x20   :  { %p111_p0 = pnand %p110_p13, %p104_p10 }
  0x22   :  { %114 = shalt.err (!%p111_p0)
}
  0x23   :  { %53 = dma.vmem_to_hbm [thread:$0]  %s51_s20, 256, %s158_s2, [#allocation4]  }
  0x24   :  { %127 = dma.done.wait [#allocation4], 256  }
  0x25   :  { %128 = vsyncadd [#allocation4], 4294967040 }
  0x26   :  { %57 = vsyncpa [#allocation3], 1 }
  0x27   :  { %58 = vsyncpa [#allocation6], 1 }
  0x28   :  { %59 = vsyncpa [#allocation4], 1 }

</bundles_post_ra>
